<compile_context>
chip_gen: v5e
topology: v5e:2x2
jax: 0.10.0
libtpu: 0.0.40
codegen_flags: <defaults>
</compile_context>

<pallas_src>
import math

import numpy as np
import jax
import jax.numpy as jnp
from jax.experimental import pallas as pl
from jax.experimental.pallas import tpu as pltpu

LANE = 128    # TPU lane width
SUBLANE = 8   # TPU sublane granularity (f32)


def _round_up(n, m):
    return ((n + m - 1) // m) * m


def make_critic_kernel(num_layers):
    """Fused kernel: all Linear layers + ReLU (between layers) in one pass."""

    def kernel(*refs):
        # refs = (x_ref, w_0..w_{L-1}, b_0..b_{L-1}, o_ref)
        x_ref = refs[0]
        w_refs = refs[1:1 + num_layers]
        b_refs = refs[1 + num_layers:1 + 2 * num_layers]
        o_ref = refs[-1]

        compute_dtype = w_refs[0].dtype          # bf16 (or f32) MXU operand dtype
        h = x_ref[...].astype(compute_dtype)     # batch on sublanes, features on lanes
        out32 = None
        for i in range(num_layers):
            # MXU matmul: reduced-precision operands, f32 accumulation; bias in f32.
            out32 = jnp.dot(h, w_refs[i][...],
                            preferred_element_type=jnp.float32) + b_refs[i][...]
            if i < num_layers - 1:
                # ReLU fused with the cast to the next layer's operand dtype:
                # halves live intermediate bytes between layers.
                h = jnp.maximum(out32, 0.0).astype(compute_dtype)
        o_ref[...] = out32.astype(o_ref.dtype)   # raw critic value (no softmax)

    return kernel


def critic_forward(x, weights, biases, *, block_b=512,
                   weight_dtype=jnp.bfloat16, out_dtype=jnp.float32):
    """Run the fused Critic forward pass via pallas_call.

    x       : (B, net_size[0]) float32
    weights : list of (in_i, out_i) float32  (stored (in, out): h @ W == torch x @ W.T)
    biases  : list of (out_i,) or (1, out_i) float32
    returns : (B, net_size[-1]) out_dtype raw critic values (no softmax)
    """
    num_layers = len(weights)
    B, d_in = x.shape
    dims = [d_in] + [w.shape[1] for w in weights]
    # Lane-pad every feature dim to a multiple of 128 (exact MXU K/N tiles).
    dims_pad = [max(LANE, _round_up(d, LANE)) for d in dims]

    # Batch tile: multiple of 8 sublanes (use 256+ in production to fill the
    # v6e/v7x MXU M dim), capped by block_b and the rounded-up batch.
    tb = min(_round_up(block_b, SUBLANE), _round_up(B, SUBLANE))
    # NO batch padding: cdiv grid + masked partial last block.
    grid = (pl.cdiv(B, tb),)

    # Lane padding only (single jnp.pad; no full zero buffer + scatter in HBM).
    xp = jnp.pad(x.astype(jnp.float32), ((0, 0), (0, dims_pad[0] - d_in)))

    # Zero-pad weights (weight_dtype) and biases (f32) to lane-dense tiles.
    wps, bps = [], []
    for i, (w, b) in enumerate(zip(weights, biases)):
        wp = jnp.pad(w.astype(weight_dtype),
                     ((0, dims_pad[i] - w.shape[0]),
                      (0, dims_pad[i + 1] - w.shape[1])))
        b2 = jnp.reshape(b, (1, -1)).astype(jnp.float32)
        bp = jnp.pad(b2, ((0, 0), (0, dims_pad[i + 1] - b2.shape[1])))
        wps.append(wp)
        bps.append(bp)

    kernel = make_critic_kernel(num_layers)

    # --- VMEM budget & cost estimate ------------------------------------------
    out_itemsize = np.dtype(out_dtype).itemsize
    w_itemsize = np.dtype(weight_dtype).itemsize
    weight_bytes = sum(int(w.size) * w_itemsize for w in wps)
    bias_bytes = sum(int(b.size) * 4 for b in bps)
    io_vmem = 2 * (tb * dims_pad[0] * 4 + tb * dims_pad[-1] * out_itemsize)  # dbl-buffered I/O tiles
    act_vmem = 2 * tb * max(dims_pad) * 4                                    # f32 intermediates
    footprint = 2 * (weight_bytes + bias_bytes) + io_vmem + act_vmem         # 2x covers fallback path
    vmem_limit_bytes = int(min(max(footprint + (4 << 20), 32 << 20), 100 << 20))

    flops = 2 * B * sum(dims_pad[i] * dims_pad[i + 1] for i in range(num_layers))
    bytes_accessed = (B * dims_pad[0] * 4 + B * dims_pad[-1] * out_itemsize
                      + weight_bytes + bias_bytes)
    cost = pl.CostEstimate(flops=flops, transcendentals=0,
                           bytes_accessed=bytes_accessed)

    out_shape = jax.ShapeDtypeStruct((B, dims_pad[-1]), out_dtype)
    compiler_params = pltpu.CompilerParams(
        dimension_semantics=("parallel",),      # batch axis -> both TCs on v7x
        vmem_limit_bytes=vmem_limit_bytes)

    def run(single_buffer_resident):
        resident_kwargs = {}
        if single_buffer_resident and hasattr(pl, "Buffered"):
            # Constant index_map -> never re-fetched; one buffer is enough.
            resident_kwargs = dict(pipeline_mode=pl.Buffered(1))
        in_specs = [pl.BlockSpec((tb, dims_pad[0]), lambda i: (i, 0))]
        in_specs += [pl.BlockSpec((dims_pad[li], dims_pad[li + 1]),
                                  lambda i: (0, 0), **resident_kwargs)
                     for li in range(num_layers)]
        in_specs += [pl.BlockSpec((1, dims_pad[li + 1]),
                                  lambda i: (0, 0), **resident_kwargs)
                     for li in range(num_layers)]
        out_spec = pl.BlockSpec((tb, dims_pad[-1]), lambda i: (i, 0))
        return pl.pallas_call(
            kernel,
            out_shape=out_shape,
            grid=grid,
            in_specs=in_specs,
            out_specs=out_spec,
            compiler_params=compiler_params,
            cost_estimate=cost,
        )(xp, *wps, *bps)

    try:
        out_padded = run(True)
    except Exception:
        # Fallback if this JAX build rejects single-buffered pipeline_mode.
        out_padded = run(False)

    # Slice away lane padding (batch was never padded).
    return out_padded[:, :dims[-1]]


def init_critic_params(key, net_size):
    """Deterministic init matching PyTorch nn.Linear default U[-1/sqrt(in), 1/sqrt(in)]."""
    weights, biases = [], []
    for i in range(len(net_size) - 1):
        fan_in, fan_out = net_size[i], net_size[i + 1]
        key, kw, kb = jax.random.split(key, 3)
        bound = 1.0 / math.sqrt(fan_in)
        w = jax.random.uniform(kw, (fan_in, fan_out), jnp.float32, -bound, bound)
        b = jax.random.uniform(kb, (fan_out,), jnp.float32, -bound, bound)
        weights.append(w)
        biases.append(b)
    return weights, biases


def critic_ref(x, weights, biases, weight_dtype=jnp.float32):
    """Pure-JAX reference (optionally matching the kernel's bf16 matmul precision)."""
    h = x.astype(jnp.float32)
    n = len(weights)
    for i in range(n):
        h = jnp.dot(h.astype(weight_dtype), weights[i].astype(weight_dtype),
                    preferred_element_type=jnp.float32) + jnp.reshape(biases[i], (1, -1))
        if i < n - 1:
            h = jnp.maximum(h, 0.0)
    return h


if __name__ == "__main__":
    net_size = [16, 32, 32, 1]   # Critic(net_size): 3 Linear layers -> scalar value
    batch = 64

    key = jax.random.PRNGKey(0)
    key, kx = jax.random.split(key)
    x = jax.random.normal(kx, (batch, net_size[0]), jnp.float32)

    weights, biases = init_critic_params(key, net_size)

    # block_b=48 exercises a multi-step batch grid with a masked partial last
    # block even at this toy size (production default is block_b=512).
    out = critic_forward(x, weights, biases, block_b=48)
    out = jax.block_until_ready(out)

    ref_same_prec = critic_ref(x, weights, biases, weight_dtype=jnp.bfloat16)
    ref_f32 = critic_ref(x, weights, biases, weight_dtype=jnp.float32)

    assert out.shape == (batch, net_size[-1])
    # Tight check vs a reference using the same bf16-operand / f32-accum matmul.
    assert jnp.allclose(out, ref_same_prec, atol=1e-4, rtol=1e-3), \
        "mismatch vs same-precision reference"
    # Loose check vs the full-f32 PyTorch-semantics reference (bf16 weight rounding).
    assert jnp.allclose(out, ref_f32, atol=5e-2, rtol=5e-2), \
        "mismatch vs f32 reference"

    print("KERNEL_OK")
</pallas_src>

<mosaic_0001>
module attributes {stable_mosaic.version = 11 : i64} {
  func.func @kernel(%arg0: i32, %arg1: memref<48x128xf32, #tpu.memory_space<vmem>>, %arg2: memref<128x128xbf16, #tpu.memory_space<vmem>>, %arg3: memref<128x128xbf16, #tpu.memory_space<vmem>>, %arg4: memref<128x128xbf16, #tpu.memory_space<vmem>>, %arg5: memref<1x128xf32, #tpu.memory_space<vmem>>, %arg6: memref<1x128xf32, #tpu.memory_space<vmem>>, %arg7: memref<1x128xf32, #tpu.memory_space<vmem>>, %arg8: memref<48x128xf32, #tpu.memory_space<vmem>>) attributes {dimension_semantics = [#tpu.dimension_semantics<parallel>], iteration_bounds = array<i64: 2>, scalar_prefetch = 0 : i64, scratch_operands = 0 : i64, tpu.core_type = #tpu.core_type<tc>, window_params = [{transform_indices = @transform_0, window_bounds = array<i64: 48, 128>}, {pipeline_mode = #tpu.pipeline_mode<synchronous>, transform_indices = @transform_1, window_bounds = array<i64: 128, 128>}, {pipeline_mode = #tpu.pipeline_mode<synchronous>, transform_indices = @transform_2, window_bounds = array<i64: 128, 128>}, {pipeline_mode = #tpu.pipeline_mode<synchronous>, transform_indices = @transform_3, window_bounds = array<i64: 128, 128>}, {pipeline_mode = #tpu.pipeline_mode<synchronous>, transform_indices = @transform_4, window_bounds = array<i64: 1, 128>}, {pipeline_mode = #tpu.pipeline_mode<synchronous>, transform_indices = @transform_5, window_bounds = array<i64: 1, 128>}, {pipeline_mode = #tpu.pipeline_mode<synchronous>, transform_indices = @transform_6, window_bounds = array<i64: 1, 128>}, {transform_indices = @transform_7, window_bounds = array<i64: 48, 128>}]} {
    %c0 = arith.constant 0 : index
    %c0_0 = arith.constant 0 : index
    %0 = vector.load %arg1[%c0, %c0_0] : memref<48x128xf32, #tpu.memory_space<vmem>>, vector<48x128xf32>
    %1 = arith.truncf %0 : vector<48x128xf32> to vector<48x128xbf16>
    %c0_1 = arith.constant 0 : index
    %c0_2 = arith.constant 0 : index
    %2 = vector.load %arg2[%c0_1, %c0_2] : memref<128x128xbf16, #tpu.memory_space<vmem>>, vector<128x128xbf16>
    %cst = arith.constant dense<0.000000e+00> : vector<48x128xf32>
    %3 = tpu.matmul %1, %2, %cst {dimension_numbers = #tpu.dot_dimension_numbers<[1], [0], [0], [1], [0, 0, 1, 1], [], []>} : vector<48x128xbf16>, vector<128x128xbf16>, vector<48x128xf32> -> vector<48x128xf32>
    %c0_3 = arith.constant 0 : index
    %c0_4 = arith.constant 0 : index
    %4 = vector.load %arg5[%c0_3, %c0_4] : memref<1x128xf32, #tpu.memory_space<vmem>>, vector<1x128xf32>
    %5 = vector.broadcast %4 : vector<1x128xf32> to vector<48x128xf32>
    %6 = arith.addf %3, %5 : vector<48x128xf32>
    %cst_5 = arith.constant 0.000000e+00 : f32
    %7 = vector.broadcast %cst_5 : f32 to vector<48x128xf32>
    %8 = arith.maximumf %6, %7 : vector<48x128xf32>
    %9 = arith.truncf %8 : vector<48x128xf32> to vector<48x128xbf16>
    %c0_6 = arith.constant 0 : index
    %c0_7 = arith.constant 0 : index
    %10 = vector.load %arg3[%c0_6, %c0_7] : memref<128x128xbf16, #tpu.memory_space<vmem>>, vector<128x128xbf16>
    %cst_8 = arith.constant dense<0.000000e+00> : vector<48x128xf32>
    %11 = tpu.matmul %9, %10, %cst_8 {dimension_numbers = #tpu.dot_dimension_numbers<[1], [0], [0], [1], [0, 0, 1, 1], [], []>} : vector<48x128xbf16>, vector<128x128xbf16>, vector<48x128xf32> -> vector<48x128xf32>
    %c0_9 = arith.constant 0 : index
    %c0_10 = arith.constant 0 : index
    %12 = vector.load %arg6[%c0_9, %c0_10] : memref<1x128xf32, #tpu.memory_space<vmem>>, vector<1x128xf32>
    %13 = vector.broadcast %12 : vector<1x128xf32> to vector<48x128xf32>
    %14 = arith.addf %11, %13 : vector<48x128xf32>
    %cst_11 = arith.constant 0.000000e+00 : f32
    %15 = vector.broadcast %cst_11 : f32 to vector<48x128xf32>
    %16 = arith.maximumf %14, %15 : vector<48x128xf32>
    %17 = arith.truncf %16 : vector<48x128xf32> to vector<48x128xbf16>
    %c0_12 = arith.constant 0 : index
    %c0_13 = arith.constant 0 : index
    %18 = vector.load %arg4[%c0_12, %c0_13] : memref<128x128xbf16, #tpu.memory_space<vmem>>, vector<128x128xbf16>
    %cst_14 = arith.constant dense<0.000000e+00> : vector<48x128xf32>
    %19 = tpu.matmul %17, %18, %cst_14 {dimension_numbers = #tpu.dot_dimension_numbers<[1], [0], [0], [1], [0, 0, 1, 1], [], []>} : vector<48x128xbf16>, vector<128x128xbf16>, vector<48x128xf32> -> vector<48x128xf32>
    %c0_15 = arith.constant 0 : index
    %c0_16 = arith.constant 0 : index
    %20 = vector.load %arg7[%c0_15, %c0_16] : memref<1x128xf32, #tpu.memory_space<vmem>>, vector<1x128xf32>
    %21 = vector.broadcast %20 : vector<1x128xf32> to vector<48x128xf32>
    %22 = arith.addf %19, %21 : vector<48x128xf32>
    %c0_17 = arith.constant 0 : index
    %c0_18 = arith.constant 0 : index
    %23 = vector.load %arg8[%c0_17, %c0_18] : memref<48x128xf32, #tpu.memory_space<vmem>>, vector<48x128xf32>
    tpu.vector_store %arg8[%c0_17, %c0_18], %22 {strides = array<i32>} : memref<48x128xf32, #tpu.memory_space<vmem>>, vector<48x128xf32>,
    return
  }
  func.func @transform_0(%arg0: i32) -> (i32, i32) {
    %c0_i32 = arith.constant 0 : i32
    %c0_i32_0 = arith.constant 0 : i32
    return %arg0, %c0_i32 : i32, i32
  }
  func.func @transform_1(%arg0: i32) -> (i32, i32) {
    %c0_i32 = arith.constant 0 : i32
    %c0_i32_0 = arith.constant 0 : i32
    %c0_i32_1 = arith.constant 0 : i32
    return %c0_i32, %c0_i32_0 : i32, i32
  }
  func.func @transform_2(%arg0: i32) -> (i32, i32) {
    %c0_i32 = arith.constant 0 : i32
    %c0_i32_0 = arith.constant 0 : i32
    %c0_i32_1 = arith.constant 0 : i32
    return %c0_i32, %c0_i32_0 : i32, i32
  }
  func.func @transform_3(%arg0: i32) -> (i32, i32) {
    %c0_i32 = arith.constant 0 : i32
    %c0_i32_0 = arith.constant 0 : i32
    %c0_i32_1 = arith.constant 0 : i32
    return %c0_i32, %c0_i32_0 : i32, i32
  }
  func.func @transform_4(%arg0: i32) -> (i32, i32) {
    %c0_i32 = arith.constant 0 : i32
    %c0_i32_0 = arith.constant 0 : i32
    %c0_i32_1 = arith.constant 0 : i32
    return %c0_i32, %c0_i32_0 : i32, i32
  }
  func.func @transform_5(%arg0: i32) -> (i32, i32) {
    %c0_i32 = arith.constant 0 : i32
    %c0_i32_0 = arith.constant 0 : i32
    %c0_i32_1 = arith.constant 0 : i32
    return %c0_i32, %c0_i32_0 : i32, i32
  }
  func.func @transform_6(%arg0: i32) -> (i32, i32) {
    %c0_i32 = arith.constant 0 : i32
    %c0_i32_0 = arith.constant 0 : i32
    %c0_i32_1 = arith.constant 0 : i32
    return %c0_i32, %c0_i32_0 : i32, i32
  }
  func.func @transform_7(%arg0: i32) -> (i32, i32) {
    %c0_i32 = arith.constant 0 : i32
    %c0_i32_0 = arith.constant 0 : i32
    return %arg0, %c0_i32 : i32, i32
  }
}

module attributes {stable_mosaic.version = 11 : i64} {
  func.func @kernel(%arg0: i32, %arg1: memref<48x128xf32, #tpu.memory_space<vmem>>, %arg2: memref<128x128xbf16, #tpu.memory_space<vmem>>, %arg3: memref<128x128xbf16, #tpu.memory_space<vmem>>, %arg4: memref<128x128xbf16, #tpu.memory_space<vmem>>, %arg5: memref<1x128xf32, #tpu.memory_space<vmem>>, %arg6: memref<1x128xf32, #tpu.memory_space<vmem>>, %arg7: memref<1x128xf32, #tpu.memory_space<vmem>>, %arg8: memref<48x128xf32, #tpu.memory_space<vmem>>) attributes {dimension_semantics = [#tpu.dimension_semantics<parallel>], iteration_bounds = array<i64: 2>, scalar_prefetch = 0 : i64, scratch_operands = 0 : i64, tpu.core_type = #tpu.core_type<tc>, window_params = [{transform_indices = @transform_0, window_bounds = array<i64: 48, 128>}, {pipeline_mode = #tpu.pipeline_mode<synchronous>, transform_indices = @transform_1, window_bounds = array<i64: 128, 128>}, {pipeline_mode = #tpu.pipeline_mode<synchronous>, transform_indices = @transform_2, window_bounds = array<i64: 128, 128>}, {pipeline_mode = #tpu.pipeline_mode<synchronous>, transform_indices = @transform_3, window_bounds = array<i64: 128, 128>}, {pipeline_mode = #tpu.pipeline_mode<synchronous>, transform_indices = @transform_4, window_bounds = array<i64: 1, 128>}, {pipeline_mode = #tpu.pipeline_mode<synchronous>, transform_indices = @transform_5, window_bounds = array<i64: 1, 128>}, {pipeline_mode = #tpu.pipeline_mode<synchronous>, transform_indices = @transform_6, window_bounds = array<i64: 1, 128>}, {transform_indices = @transform_7, window_bounds = array<i64: 48, 128>}]} {
    %c0 = arith.constant 0 : index
    %c0_0 = arith.constant 0 : index
    %0 = vector.load %arg1[%c0, %c0_0] : memref<48x128xf32, #tpu.memory_space<vmem>>, vector<48x128xf32>
    %1 = arith.truncf %0 : vector<48x128xf32> to vector<48x128xbf16>
    %c0_1 = arith.constant 0 : index
    %c0_2 = arith.constant 0 : index
    %2 = vector.load %arg2[%c0_1, %c0_2] : memref<128x128xbf16, #tpu.memory_space<vmem>>, vector<128x128xbf16>
    %cst = arith.constant dense<0.000000e+00> : vector<48x128xf32>
    %3 = tpu.matmul %1, %2, %cst {dimension_numbers = #tpu.dot_dimension_numbers<[1], [0], [0], [1], [0, 0, 1, 1], [], []>} : vector<48x128xbf16>, vector<128x128xbf16>, vector<48x128xf32> -> vector<48x128xf32>
    %c0_3 = arith.constant 0 : index
    %c0_4 = arith.constant 0 : index
    %4 = vector.load %arg5[%c0_3, %c0_4] : memref<1x128xf32, #tpu.memory_space<vmem>>, vector<1x128xf32>
    %5 = vector.broadcast %4 : vector<1x128xf32> to vector<48x128xf32>
    %6 = arith.addf %3, %5 : vector<48x128xf32>
    %cst_5 = arith.constant 0.000000e+00 : f32
    %7 = vector.broadcast %cst_5 : f32 to vector<48x128xf32>
    %8 = arith.maximumf %6, %7 : vector<48x128xf32>
    %9 = arith.truncf %8 : vector<48x128xf32> to vector<48x128xbf16>
    %c0_6 = arith.constant 0 : index
    %c0_7 = arith.constant 0 : index
    %10 = vector.load %arg3[%c0_6, %c0_7] : memref<128x128xbf16, #tpu.memory_space<vmem>>, vector<128x128xbf16>
    %cst_8 = arith.constant dense<0.000000e+00> : vector<48x128xf32>
    %11 = tpu.matmul %9, %10, %cst_8 {dimension_numbers = #tpu.dot_dimension_numbers<[1], [0], [0], [1], [0, 0, 1, 1], [], []>} : vector<48x128xbf16>, vector<128x128xbf16>, vector<48x128xf32> -> vector<48x128xf32>
    %c0_9 = arith.constant 0 : index
    %c0_10 = arith.constant 0 : index
    %12 = vector.load %arg6[%c0_9, %c0_10] : memref<1x128xf32, #tpu.memory_space<vmem>>, vector<1x128xf32>
    %13 = vector.broadcast %12 : vector<1x128xf32> to vector<48x128xf32>
    %14 = arith.addf %11, %13 : vector<48x128xf32>
    %cst_11 = arith.constant 0.000000e+00 : f32
    %15 = vector.broadcast %cst_11 : f32 to vector<48x128xf32>
    %16 = arith.maximumf %14, %15 : vector<48x128xf32>
    %17 = arith.truncf %16 : vector<48x128xf32> to vector<48x128xbf16>
    %c0_12 = arith.constant 0 : index
    %c0_13 = arith.constant 0 : index
    %18 = vector.load %arg4[%c0_12, %c0_13] : memref<128x128xbf16, #tpu.memory_space<vmem>>, vector<128x128xbf16>
    %cst_14 = arith.constant dense<0.000000e+00> : vector<48x128xf32>
    %19 = tpu.matmul %17, %18, %cst_14 {dimension_numbers = #tpu.dot_dimension_numbers<[1], [0], [0], [1], [0, 0, 1, 1], [], []>} : vector<48x128xbf16>, vector<128x128xbf16>, vector<48x128xf32> -> vector<48x128xf32>
    %c0_15 = arith.constant 0 : index
    %c0_16 = arith.constant 0 : index
    %20 = vector.load %arg7[%c0_15, %c0_16] : memref<1x128xf32, #tpu.memory_space<vmem>>, vector<1x128xf32>
    %21 = vector.broadcast %20 : vector<1x128xf32> to vector<48x128xf32>
    %22 = arith.addf %19, %21 : vector<48x128xf32>
    %c0_17 = arith.constant 0 : index
    %c0_18 = arith.constant 0 : index
    %23 = vector.load %arg8[%c0_17, %c0_18] : memref<48x128xf32, #tpu.memory_space<vmem>>, vector<48x128xf32>
    tpu.vector_store %arg8[%c0_17, %c0_18], %22 {strides = array<i32>} : memref<48x128xf32, #tpu.memory_space<vmem>>, vector<48x128xf32>,
    return
  }
  func.func @transform_0(%arg0: i32) -> (i32, i32) {
    %c0_i32 = arith.constant 0 : i32
    %c0_i32_0 = arith.constant 0 : i32
    return %arg0, %c0_i32 : i32, i32
  }
  func.func @transform_1(%arg0: i32) -> (i32, i32) {
    %c0_i32 = arith.constant 0 : i32
    %c0_i32_0 = arith.constant 0 : i32
    %c0_i32_1 = arith.constant 0 : i32
    return %c0_i32, %c0_i32_0 : i32, i32
  }
  func.func @transform_2(%arg0: i32) -> (i32, i32) {
    %c0_i32 = arith.constant 0 : i32
    %c0_i32_0 = arith.constant 0 : i32
    %c0_i32_1 = arith.constant 0 : i32
    return %c0_i32, %c0_i32_0 : i32, i32
  }
  func.func @transform_3(%arg0: i32) -> (i32, i32) {
    %c0_i32 = arith.constant 0 : i32
    %c0_i32_0 = arith.constant 0 : i32
    %c0_i32_1 = arith.constant 0 : i32
    return %c0_i32, %c0_i32_0 : i32, i32
  }
  func.func @transform_4(%arg0: i32) -> (i32, i32) {
    %c0_i32 = arith.constant 0 : i32
    %c0_i32_0 = arith.constant 0 : i32
    %c0_i32_1 = arith.constant 0 : i32
    return %c0_i32, %c0_i32_0 : i32, i32
  }
  func.func @transform_5(%arg0: i32) -> (i32, i32) {
    %c0_i32 = arith.constant 0 : i32
    %c0_i32_0 = arith.constant 0 : i32
    %c0_i32_1 = arith.constant 0 : i32
    return %c0_i32, %c0_i32_0 : i32, i32
  }
  func.func @transform_6(%arg0: i32) -> (i32, i32) {
    %c0_i32 = arith.constant 0 : i32
    %c0_i32_0 = arith.constant 0 : i32
    %c0_i32_1 = arith.constant 0 : i32
    return %c0_i32, %c0_i32_0 : i32, i32
  }
  func.func @transform_7(%arg0: i32) -> (i32, i32) {
    %c0_i32 = arith.constant 0 : i32
    %c0_i32_0 = arith.constant 0 : i32
    return %arg0, %c0_i32 : i32, i32
  }
}

</mosaic_0001>

<bundles_post_ra>
// kernel: tpu_custom_call.1
= control target key start
LH: loop header
LB: loop body
LE: loop exit
PB: predicated region body
PF: predicated region fallthrough
CT: control target
= control target key end

     0   :  { %s1548_s0 = inlined_call_operand.hbm [shape: f32[64,128], index: 0, kind: input, shape index: {}]   ;;  %s1549_s1 = inlined_call_operand.hbm [shape: bf16[128,128], index: 1, kind: input, shape index: {}]   ;;  %s1550_s2 = inlined_call_operand.hbm [shape: bf16[128,128], index: 2, kind: input, shape index: {}]   ;;  %s1551_s3 = inlined_call_operand.hbm [shape: bf16[128,128], index: 3, kind: input, shape index: {}]   ;;  %s1552_s4 = inlined_call_operand.vmem [shape: f32[1,128], index: 4, kind: input, shape index: {}]   ;;  %s1553_s5 = inlined_call_operand.vmem [shape: f32[1,128], index: 5, kind: input, shape index: {}]   ;;  %s1554_s6 = inlined_call_operand.vmem [shape: f32[1,128], index: 6, kind: input, shape index: {}]   ;;  %s1555_s7 = inlined_call_operand.hbm [shape: f32[64,128], index: 7, kind: output, shape index: {}]  }
   0x1   :  { %1558 = sst [smem:[#allocation16_spill]] %s1549_s1 }
   0x2   :  { %1559 = sst [smem:[#allocation17_spill]] %s1550_s2 }
   0x3   :  { %1560 = sst [smem:[#allocation18_spill]] %s1551_s3 }
   0x4   :  { %12 = vsyncpa [#allocation3], 0 }
   0x5   :  { %14 = vsyncpa [#allocation3 + $0x1], 0 }
   0x6   :  { %15 = vsyncpa [#allocation6], 0 }
   0x7   :  { %16 = vsyncpa [#allocation9], 0 }
   0x8   :  { %17 = vsyncpa [#allocation4], 0 }
   0x9   :  { %19 = vsyncpa [#allocation4 + $0x1], 0  ;;  %s1300_s24 = smov 0   ;;  %s1302_s25 = smov 0  }
   0xa   :  { %s1304_s26 = smov 0   ;;  %s1306_s27 = smov 0  }
   0xb LB: > { %s1321_s28 = sadd.s32 4294967295, %s1247_s27   ;;  %s800_s29 = sadd.s32 4294967294, %s1247_s27   ;;  %s1247_s27 = sphi %s1306_s27, %s1583_s27   ;;  %s1243_s26 = sphi %s1304_s26, %s1582_s26   ;;  %s1239_s25 = sphi %s1302_s25, %s1581_s25   ;;  %s1235_s24 = sphi %s1300_s24, %s1580_s24  }
   0xc   : > { %s1325_s30 = sadd.s32 1, %s1247_s27   ;;  %s32_s8 = sadd.s32 1, %s1243_s26 }
   0xd   : > { %s29_s9 = ssub.s32 %s1247_s27, %s1325_s30  ;;  %p39_p0 = scmp.ne.s32.totalorder %s1243_s26, %s1239_s25 }
   0xe   : > { %p30_p1 = scmp.eq.s32.totalorder %s29_s9, 0  ;;  %p40_p2 = scmp.eq.s32.totalorder %s1247_s27, 0 }
   0xf   : > { %p45_p3 = scmp.ne.s32.totalorder %s1239_s25, %s1235_s24  ;;  %p1557_p4 = scmp.eq.s32.totalorder %s1321_s28, 0 }
  0x10   : > { %s1337_s10 = scalar_select %p30_p1, %s1243_s26, %s32_s8  }
  0x11   : > { %p1339_p5 = por %p40_p2, %p39_p0  ;;  %p1345_p6 = por %p1557_p4, %p45_p3 }
  0x12   : > { %1561 = sst [smem:[#allocation15_spill]] %s1337_s10  ;;  %p195_p7 = scmp.eq.s32.totalorder %s1321_s28, 1 }
  0x13   : > { %p201_p8 = scmp.eq.s32.totalorder %s800_s29, 1  ;;  %p801_p9 = scmp.ge.s32.totalorder %s1247_s27, 1 }
  0x14   : > { %p208_p10 = scmp.lt.s32.totalorder %s1247_s27, 3  ;;  %p1352_p11 = por %p195_p7, %p39_p0 }
  0x15   : > { %p1356_p12 = por %p201_p8, %p45_p3  ;;  %s1567_s1 = sld [smem:[#allocation16_spill]] }
  0x16   : > { %p1360_p13 = pnand %p801_p9, %p208_p10  ;;  %s1249_s19 = smov [#allocation5]  }
  0x17   : > { %s1565_s14 = scalar_select %p1356_p12, 1, 0 }
  0x18   : > { %p968_p1 = pneg %p1360_p13  ;;  %s221_s20 = sshll.u32 %s1249_s19, 4  ;;  %s222_s20 = int_to_ptr.vmem [resolvable:$true] %s221_s20 }
  0x19   : > { %s1569_s2 = sld [smem:[#allocation17_spill]]  ;;  %s1250_s8 = smov 64  }
  0x1a   : > { %p1371_p0 = pnand %p968_p1, %p1557_p4  ;;  %s1251_s9 = smov 4  }
  0x1b   : > { %s219_s18 = sshll.u32 %s1567_s1, 4  ;;  %s1570_s3 = sld [smem:[#allocation18_spill]]  ;;  %s220_s18 = int_to_ptr.hbm [resolvable:$true] %s219_s18 }
  0x1c   : > { %971 = dma.hbm_to_vmem [thread:$0]  (!%p1371_p0), %s220_s18, 1024, %s222_s20, [#allocation6], %s1250_s8, %s1250_s8, %s1251_s9  }
  0x1d   : > { %s1252_s1 = smov [#allocation7]   ;;  %s1253_s22 = smov [#allocation8]  }
  0x1e   : > { %s235_s10 = sshll.u32 %s1252_s1, 4  ;;  %s249_s23 = sshll.u32 %s1253_s22, 4  ;;  %s236_s10 = int_to_ptr.vmem [resolvable:$true] %s235_s10  ;;  %s250_s23 = int_to_ptr.vmem [resolvable:$true] %s249_s23 }
  0x1f   : > { %s233_s29 = sshll.u32 %s1569_s2, 4  ;;  %p1556_p2 = scmp.ge.s32.totalorder %s1247_s27, 2  ;;  %s234_s29 = int_to_ptr.hbm [resolvable:$true] %s233_s29 }
  0x20   : > { %974 = dma.hbm_to_vmem [thread:$0]  (!%p1371_p0), %s234_s29, 1024, %s236_s10, [#allocation6], %s1250_s8, %s1250_s8, %s1251_s9  }
  0x21   : > { %s247_s19 = sshll.u32 %s1570_s3, 4  ;;  %268 = sbr.rel (%p1556_p2) target bundleno = 76 (0x4c), region = 40  ;;  %s248_s19 = int_to_ptr.hbm [resolvable:$true] %s247_s19 }
  0x22   : > { %977 = dma.hbm_to_vmem [thread:$0]  (!%p1371_p0), %s248_s19, 1024, %s250_s23, [#allocation9], %s1250_s8, %s1250_s8, %s1251_s9  }
  0x26   : > { %271 = sbr.rel (!%p1339_p5) target bundleno = 76 (0x4c), region = 44  ;;  %s272_s1 = sand.u32 (%p1339_p5), 1, %s1243_s26  }
  0x27   : > { %s277_s18 = smul.u32 (%p1339_p5), 6, %s1247_s27  ;;  %s1397_s8 = scalar_lea.sflag (%p1339_p5), [#allocation3], %s272_s1 }
  0x28   : > { %s952_s20 = smul.u32 (%p1339_p5), 48, %s272_s1 }
  0x29   : > { %s278_s16 = ssub.s32 (%p1339_p5), 8, %s277_s18 }
  0x2a   : > { %p279_p3 = scmp.lt.s32.totalorder (%p1339_p5), %s278_s16, 6  ;;  %s276_s9 = scalar_lea.vmem (%p1339_p5), [#allocation2], %s952_s20 }
  0x2c   : > { %s1585_s16 = smov (!%p279_p3, %s278_s16), 6 }
  0x2d   : > { %s806_s10 = sshll.u32 %s1585_s16, 3 }
  0x2e   : > { %s282_s21 = ssub.s32 48, %s806_s10 }
  0x2f   : > { %s283_s29 = sshll.u32 %s282_s21, 4 }
  0x30   : > { %284 = vsyncadd %s1397_s8, %s283_s29  ;;  %p1400_p5 = scmp.ne.s32.totalorder %s806_s10, 0  ;;  %s918_s17 = smul.u32 48, %s1247_s27 }
  0x31   : > { %s1405_s19 = sshll.u32 %s276_s9, 4  ;;  %s810_s22 = sshll.u32 %s1585_s16, 7  ;;  %s292_s19 = int_to_ptr.vmem [resolvable:$true] %s1405_s19 }
  0x32   : > { %s287_s1 = scalar_lea.hbm %s1548_s0, %s918_s17  ;;  %s1125_s10 = sshrl.u32 %s810_s22, 4 }
  0x33   : > { %s289_s20 = sshll.u32 %s287_s1, 4  ;;  %s1134_s3 = scalar_lea.hbm %s1548_s0, 64  ;;  %s1412_s20 = int_to_ptr.hbm [resolvable:$true] %s289_s20 }
  0x34   : > { %s1123_s21 = sshra.s32 %s1412_s20, 4  ;;  %s1124_s21 = int_to_ptr.hbm [resolvable:$true] %s1123_s21 }
  0x35   : > { %s1130_s29 = scalar_lea.hbm %s1124_s21, %s1125_s10  ;;  %p1135_p10 = scmp.lt.s32.totalorder %s1124_s21, %s1548_s0 }
  0x36   : > { %p1131_p7 = scmp.ne.s32.totalorder %s1124_s21, %s1130_s29  ;;  %p1136_p1 = scmp.lt.s32.totalorder %s1134_s3, %s1130_s29 }
  0x38   : > { %p1132_p8 = pnand %p1131_p7, %p1400_p5  ;;  %p1137_p0 = por %p1136_p1, %p1135_p10 }
  0x3a   : > { %p1133_p9 = pneg %p1132_p8 }
  0x3c   : > { %p1138_p3 = pnand %p1137_p0, %p1133_p9 }
  0x3e   : > { %1141 = shalt.err (!%p1138_p3)
}
  0x3f   : > { %s1142_s18 = sshra.s32 %s292_s19, 4  ;;  %s1254_s2 = smov [#allocation2]   ;;  %s1143_s18 = int_to_ptr.vmem [resolvable:$true] %s1142_s18 }
  0x40   : > { %s1149_s1 = scalar_lea.vmem %s1143_s18, %s1125_s10  ;;  %s1153_s9 = scalar_lea.vmem %s1254_s2, 96 }
  0x41   : > { %p1150_p7 = scmp.ne.s32.totalorder %s1143_s18, %s1149_s1  ;;  %p1155_p4 = scmp.lt.s32.totalorder %s1153_s9, %s1149_s1 }
  0x43   : > { %p1151_p8 = pnand %p1150_p7, %p1400_p5 }
  0x45   : > { %p1152_p2 = pneg %p1151_p8 }
  0x47   : > { %p1157_p12 = pnand %p1155_p4, %p1152_p2 }
  0x49   : > { %1160 = shalt.err (!%p1157_p12)
}
  0x4a   : > { %s1255_s21 = smov 128   ;;  %s1256_s3 = smov 8  }
  0x4b   : > { %297 = dma.hbm_to_vmem [thread:$0]  (%p1400_p5), %s1412_s20, %s810_s22, %s292_s19, %s1397_s8, %s1255_s21, %s1255_s21, %s1256_s3  }
  0x4c PF: > { %303 = sbr.rel (%p1360_p13) target bundleno = 606 (0x25e), region = 48  ;;  %s1440_s10 = sand.u32 (!%p1360_p13), 1, %s1239_s25  }
  0x4d   : > { %s953_s29 = smul.u32 (!%p1360_p13), 48, %s1440_s10  ;;  %s306_s23 = scalar_lea.sflag (!%p1360_p13), [#allocation3], %s1440_s10 }
  0x4f   : > { %s1446_s17 = scalar_lea.vmem (!%p1360_p13), [#allocation2], %s953_s29 }
  0x51   : > { %1218 = dma.done.wait (%p1345_p6), %s306_s23, 768  }
  0x52   : > { %1220 = vsyncadd (%p1345_p6), %s306_s23, 4294966528  ;;  %p1572_p4 = scmp.eq.s32.totalorder %s1321_s28, 0 }
  0x54   : > { %1222 = dma.done.wait (%p1572_p4), [#allocation6], 2048   ;;  %p1573_p12 = pmov %p1572_p4 }
  0x55   : > { %p1574_p13 = pmov %p1572_p4 }
  0x56   : > { %1224 = vsyncadd (%p1573_p12), [#allocation6], 4294965248 }
  0x57   : > { %1226 = dma.done.wait (%p1574_p13), [#allocation9], 1024   ;;  %p1575_p2 = pmov %p1572_p4 }
  0x58   : > { %v926_v0 = vld [vmem:[#allocation5 + $0x38] sm:$0xff]  ;;  %v925_v1 = vld [vmem:[#allocation5 + $0x30] sm:$0xff]  ;;  %v924_v2 = vld [vmem:[#allocation5 + $0x28] sm:$0xff]  ;;  %s1477_s22 = scalar_lea.vmem [#allocation10], %s953_s29  ;;  %s676_s20 = scalar_lea.sflag [#allocation4], %s1440_s10 }
  0x59   : > { %1228 = vsyncadd (%p1575_p2), [#allocation9], 4294966272  ;;  %443 = vmatpush.bf16.msra.mxu0 %v926_v0  ;;  %944 = vmatpush.bf16.msra.mxu3 %v926_v0  ;;  %v923_v3 = vld [vmem:[#allocation5 + $0x20] sm:$0xff]  ;;  %v922_v4 = vld [vmem:[#allocation5 + $0x18] sm:$0xff]  ;;  %s683_s18 = smul.u32 (%p1352_p11), 6, %s1321_s28 }
  0x5a   : > { %v934_v5 = vld [vmem:[#allocation7 + $0x38] sm:$0xff]  ;;  %v921_v6 = vld [vmem:[#allocation5 + $0x10] sm:$0xff]  ;;  %v920_v8 = vld [vmem:[#allocation5 + $0x8] sm:$0xff] }
  0x5b   : > { %544 = vmatpush.bf16.msra.mxu1 %v934_v5  ;;  %v933_v7 = vld [vmem:[#allocation7 + $0x30] sm:$0xff]  ;;  %v932_v9 = vld [vmem:[#allocation7 + $0x28] sm:$0xff]  ;;  %v919_v10 = vld [vmem:[#allocation5] sm:$0xff]  ;;  %s684_s1 = ssub.s32 (%p1352_p11), 8, %s683_s18 }
  0x5c   : > { %v366_v11 = vld [vmem:[%s1446_s17] sm:$0xff]  ;;  %v367_v12 = vld [vmem:[%s1446_s17 + $0x8] sm:$0xff]  ;;  %v368_v13 = vld [vmem:[%s1446_s17 + $0x10] sm:$0xff]  ;;  %p685_p6 = scmp.lt.s32.totalorder (%p1352_p11), %s684_s1, 6 }
  0x5d   : > { %444 = vmatpush.bf16.msra.mxu0 %v925_v1  ;;  %945 = vmatpush.bf16.msra.mxu3 %v925_v1  ;;  %v369_v14 = vld [vmem:[%s1446_s17 + $0x18] sm:$0xff]  ;;  %v931_v15 = vld [vmem:[#allocation7 + $0x20] sm:$0xff]  ;;  %v372_v16 = vpack.c.bf16 %v367_v12, %v366_v11  ;;  %v371_v19 = vld [vmem:[%s1446_s17 + $0x28] sm:$0xff] }
  0x5e   : > { %v373_v17 = vpack.c.bf16 %v369_v14, %v368_v13  ;;  %v370_v18 = vld [vmem:[%s1446_s17 + $0x20] sm:$0xff]  ;;  %v930_v21 = vld [vmem:[#allocation7 + $0x18] sm:$0xff]  ;;  %v928_v23 = vld [vmem:[#allocation7 + $0x8] sm:$0xff] }
  0x5f   : > { %545 = vmatpush.bf16.msra.mxu1 %v933_v7  ;;  %v374_v20 = vpack.c.bf16 %v371_v19, %v370_v18  ;;  %v929_v22 = vld [vmem:[#allocation7 + $0x10] sm:$0xff]  ;;  %v927_v24 = vld [vmem:[#allocation7] sm:$0xff]  ;;  %v942_v35 = vld [vmem:[#allocation8 + $0x38] sm:$0xff] }
  0x60   : > { %v1030_v26 = vld [vmem:[%s1552_s4] ss:$0 sm:$0xff]  ;;  %645 = vmatpush.bf16.msra.mxu2 %v942_v35  ;;  %v941_v36 = vld [vmem:[#allocation8 + $0x30] sm:$0xff]  ;;  %v940_v39 = vld [vmem:[#allocation8 + $0x28] sm:$0xff] }
  0x61   : > { %445 = vmatpush.bf16.msra.mxu0 %v924_v2  ;;  %946 = vmatpush.bf16.msra.mxu3 %v924_v2  ;;  %v939_v43 = vld [vmem:[#allocation8 + $0x20] sm:$0xff]  ;;  %v938_v51 = vld [vmem:[#allocation8 + $0x18] sm:$0xff]  ;;  %v937_v52 = vld [vmem:[#allocation8 + $0x10] sm:$0xff] }
  0x62   : > { %v936_v53 = vld [vmem:[#allocation8 + $0x8] sm:$0xff]  ;;  %v935_v54 = vld [vmem:[#allocation8] sm:$0xff] }
  0x63   : > { %546 = vmatpush.bf16.msra.mxu1 %v932_v9  ;;  %v1031_v56 = vld [vmem:[%s1553_s5] ss:$0 sm:$0xff] }
  0x64   : > { %646 = vmatpush.bf16.msra.mxu2 %v941_v36  ;;  %v1032_v13 = vld [vmem:[%s1554_s6] ss:$0 sm:$0xff] }
  0x65   : > { %446 = vmatpush.bf16.msra.mxu0 %v923_v3  ;;  %947 = vmatpush.bf16.msra.mxu3 %v923_v3 }
  0x67   : > { %547 = vmatpush.bf16.msra.mxu1 %v931_v15 }
  0x68   : > { %647 = vmatpush.bf16.msra.mxu2 %v940_v39 }
  0x69   : > { %447 = vmatpush.bf16.msra.mxu0 %v922_v4  ;;  %948 = vmatpush.bf16.msra.mxu3 %v922_v4 }
  0x6b   : > { %548 = vmatpush.bf16.msra.mxu1 %v930_v21 }
  0x6c   : > { %648 = vmatpush.bf16.msra.mxu2 %v939_v43 }
  0x6d   : > { %448 = vmatpush.bf16.msra.mxu0 %v921_v6  ;;  %949 = vmatpush.bf16.msra.mxu3 %v921_v6 }
  0x6f   : > { %549 = vmatpush.bf16.msra.mxu1 %v929_v22 }
  0x70   : > { %649 = vmatpush.bf16.msra.mxu2 %v938_v51 }
  0x71   : > { %449 = vmatpush.bf16.msra.mxu0 %v920_v8  ;;  %950 = vmatpush.bf16.msra.mxu3 %v920_v8 }
  0x73   : > { %550 = vmatpush.bf16.msra.mxu1 %v928_v23 }
  0x74   : > { %650 = vmatpush.bf16.msra.mxu2 %v937_v52 }
  0x75   : > { %450 = vmatpush.bf16.msra.mxu0 %v919_v10  ;;  %951 = vmatpush.bf16.msra.mxu3 %v919_v10 }
  0x77   : > { %551 = vmatpush.bf16.msra.mxu1 %v927_v24 }
  0x78   : > { %451 = vmatmul.bf16.vlgmr.msra.gmra.mxu0 %v372_v16  ;;  %456 = vmatmul.bf16.vlgmr.msra.gmra.mxu3 %v373_v17 }
  0x79   : > { %651 = vmatpush.bf16.msra.mxu2 %v936_v53 }
  0x7d   : > { %652 = vmatpush.bf16.msra.mxu2 %v935_v54 }
  0x88   : > { %461 = vmatmul.bf16.gmra.mxu3 %v374_v20 }
  0xf5   : > { %v452_v25 = vpop.f32.mrf.mxu0 }
  0xf6   : > { %v453_v28 = vadd.f32 %v1030_v26, %v452_v25 }
  0xf8   : > { %v467_v31 = vmax.f32 %v453_v28, 0.0 }
  0xfb   : > { %v457_v27 = vpop.f32.mrf.mxu3 }
  0xfc   : > { %v458_v37 = vadd.f32 %v1030_v26, %v457_v27 }
  0xfd   : > { %v454_v29 = vpop.f32.mrf.mxu0 }
  0xfe   : > { %v455_v30 = vadd.f32 %v1030_v26, %v454_v29  ;;  %v469_v41 = vmax.f32 %v458_v37, 0.0 }
 0x100   : > { %v468_v32 = vmax.f32 %v455_v30, 0.0 }
 0x102   : > { %v473_v33 = vpack.c.bf16 %v468_v32, %v467_v31 }
 0x103   : > { %v459_v34 = vpop.f32.mrf.mxu3 }
 0x104   : > { %552 = vmatmul.bf16.vlgmr.msra.gmra.mxu1 %v473_v33  ;;  %v460_v38 = vadd.f32 %v1030_v26, %v459_v34 }
 0x106   : > { %v470_v42 = vmax.f32 %v460_v38, 0.0 }
 0x108   : > { %v474_v44 = vpack.c.bf16 %v470_v42, %v469_v41 }
 0x10b   : > { %v462_v40 = vpop.f32.mrf.mxu3 }
 0x10c   : > { %v463_v46 = vadd.f32 %v1030_v26, %v462_v40 }
 0x10e   : > { %v471_v48 = vmax.f32 %v463_v46, 0.0 }
 0x113   : > { %v464_v45 = vpop.f32.mrf.mxu3 }
 0x114   : > { %557 = vmatmul.bf16.gmra.mxu1 %v474_v44  ;;  %v465_v47 = vadd.f32 %v1030_v26, %v464_v45 }
 0x116   : > { %v472_v49 = vmax.f32 %v465_v47, 0.0 }
 0x118   : > { %v475_v50 = vpack.c.bf16 %v472_v49, %v471_v48 }
 0x124   : > { %562 = vmatmul.bf16.gmra.mxu1 %v475_v50 }
 0x181   : > { %v553_v55 = vpop.f32.mrf.mxu1 }
 0x182   : > { %v554_v57 = vadd.f32 %v1031_v56, %v553_v55 }
 0x184   : > { %v568_v60 = vmax.f32 %v554_v57, 0.0 }
 0x189   : > { %v555_v58 = vpop.f32.mrf.mxu1 }
 0x18a   : > { %v556_v59 = vadd.f32 %v1031_v56, %v555_v58 }
 0x18c   : > { %v569_v61 = vmax.f32 %v556_v59, 0.0 }
 0x18e   : > { %v574_v62 = vpack.c.bf16 %v569_v61, %v568_v60 }
 0x190   : > { %653 = vmatmul.bf16.vlgmr.msra.gmra.mxu2 %v574_v62 }
 0x191   : > { %v558_v63 = vpop.f32.mrf.mxu1 }
 0x192   : > { %v559_v0 = vadd.f32 %v1031_v56, %v558_v63 }
 0x194   : > { %v570_v3 = vmax.f32 %v559_v0, 0.0 }
 0x199   : > { %v560_v1 = vpop.f32.mrf.mxu1 }
 0x19a   : > { %v561_v2 = vadd.f32 %v1031_v56, %v560_v1 }
 0x19c   : > { %v571_v4 = vmax.f32 %v561_v2, 0.0 }
 0x19e   : > { %v575_v5 = vpack.c.bf16 %v571_v4, %v570_v3 }
 0x1a0   : > { %658 = vmatmul.bf16.gmra.mxu2 %v575_v5 }
 0x1a1   : > { %v563_v6 = vpop.f32.mrf.mxu1 }
 0x1a2   : > { %v564_v7 = vadd.f32 %v1031_v56, %v563_v6 }
 0x1a4   : > { %v572_v10 = vmax.f32 %v564_v7, 0.0 }
 0x1a9   : > { %v565_v8 = vpop.f32.mrf.mxu1 }
 0x1aa   : > { %v566_v9 = vadd.f32 %v1031_v56, %v565_v8 }
 0x1ac   : > { %v573_v11 = vmax.f32 %v566_v9, 0.0 }
 0x1ae   : > { %v576_v12 = vpack.c.bf16 %v573_v11, %v572_v10 }
 0x1b0   : > { %663 = vmatmul.bf16.gmra.mxu2 %v576_v12 }
 0x213   : > { %v654_v14 = vpop.f32.mrf.mxu2 }
 0x214   : > { %v655_v15 = vadd.f32 %v1032_v13, %v654_v14 }
 0x216   : > { %669 = vst [vmem:[%s1477_s22] sm:$0xff] %v655_v15 }
 0x21b   : > { %v656_v16 = vpop.f32.mrf.mxu2 }
 0x21c   : > { %v657_v17 = vadd.f32 %v1032_v13, %v656_v16 }
 0x21e   : > { %670 = vst [vmem:[%s1477_s22 + $0x8] sm:$0xff] %v657_v17 }
 0x223   : > { %v659_v18 = vpop.f32.mrf.mxu2 }
 0x224   : > { %v660_v19 = vadd.f32 %v1032_v13, %v659_v18 }
 0x226   : > { %671 = vst [vmem:[%s1477_s22 + $0x10] sm:$0xff] %v660_v19 }
 0x22b   : > { %v661_v20 = vpop.f32.mrf.mxu2 }
 0x22c   : > { %v662_v21 = vadd.f32 %v1032_v13, %v661_v20 }
 0x22e   : > { %672 = vst [vmem:[%s1477_s22 + $0x18] sm:$0xff] %v662_v21 }
 0x233   : > { %v664_v22 = vpop.f32.mrf.mxu2 }
 0x234   : > { %v665_v23 = vadd.f32 %v1032_v13, %v664_v22 }
 0x236   : > { %673 = vst [vmem:[%s1477_s22 + $0x20] sm:$0xff] %v665_v23 }
 0x23a   : > { %682 = sbr.rel (!%p1352_p11) target bundleno = 606 (0x25e), region = 68 }
 0x23b   : > { %v666_v24 = vpop.f32.mrf.mxu2 }
 0x23c   : > { %v667_v25 = vadd.f32 %v1032_v13, %v666_v24 }
 0x23e   : > { %674 = vst [vmem:[%s1477_s22 + $0x28] sm:$0xff] %v667_v25 }
 0x23f   : > { %s1587_s1 = smov (!%p685_p6, %s684_s1), 6 }
 0x240   : > { %s911_s2 = sshll.u32 %s1587_s1, 3 }
 0x241   : > { %s688_s9 = ssub.s32 48, %s911_s2 }
 0x242   : > { %s689_s21 = sshll.u32 %s688_s9, 4 }
 0x243   : > { %690 = vsyncadd %s676_s20, %s689_s21  ;;  %p1494_p5 = scmp.ne.s32.totalorder %s911_s2, 0  ;;  %s943_s3 = smul.u32 48, %s1321_s28 }
 0x244   : > { %s695_s29 = sshll.u32 %s1477_s22, 4  ;;  %s915_s23 = sshll.u32 %s1587_s1, 7  ;;  %s1504_s29 = int_to_ptr.vmem [resolvable:$true] %s695_s29 }
 0x245   : > { %s693_s15 = scalar_lea.hbm %s1555_s7, %s943_s3  ;;  %s1162_s8 = sshra.s32 %s1504_s29, 4  ;;  %s1163_s8 = int_to_ptr.vmem [resolvable:$true] %s1162_s8 }
 0x246   : > { %s697_s16 = sshll.u32 %s693_s15, 4  ;;  %s1164_s11 = sshrl.u32 %s915_s23, 4  ;;  %s1506_s16 = int_to_ptr.hbm [resolvable:$true] %s697_s16 }
 0x247   : > { %s1169_s19 = scalar_lea.vmem %s1163_s8, %s1164_s11  ;;  %s1257_s28 = smov [#allocation10]  }
 0x248   : > { %p1170_p11 = scmp.ne.s32.totalorder %s1163_s8, %s1169_s19  ;;  %s1173_s22 = scalar_lea.vmem %s1257_s28, 96 }
 0x249   : > { %p1175_p1 = scmp.lt.s32.totalorder %s1173_s22, %s1169_s19 }
 0x24a   : > { %p1171_p9 = pnand %p1170_p11, %p1494_p5 }
 0x24c   : > { %p1172_p10 = pneg %p1171_p9 }
 0x24e   : > { %p1177_p0 = pnand %p1175_p1, %p1172_p10 }
 0x250   : > { %1180 = shalt.err (!%p1177_p0)
}
 0x251   : > { %s1181_s18 = sshra.s32 %s1506_s16, 4  ;;  %s1192_s3 = scalar_lea.hbm %s1555_s7, 64  ;;  %s1182_s18 = int_to_ptr.hbm [resolvable:$true] %s1181_s18 }
 0x252   : > { %s1188_s2 = scalar_lea.hbm %s1182_s18, %s1164_s11  ;;  %p1193_p4 = scmp.lt.s32.totalorder %s1182_s18, %s1555_s7 }
 0x253   : > { %p1189_p3 = scmp.ne.s32.totalorder %s1182_s18, %s1188_s2  ;;  %p1194_p12 = scmp.lt.s32.totalorder %s1192_s3, %s1188_s2 }
 0x255   : > { %p1190_p7 = pnand %p1189_p3, %p1494_p5  ;;  %p1195_p13 = por %p1194_p12, %p1193_p4 }
 0x257   : > { %p1191_p8 = pneg %p1190_p7 }
 0x259   : > { %p1196_p2 = pnand %p1195_p13, %p1191_p8 }
 0x25b   : > { %1199 = shalt.err (!%p1196_p2)
}
 0x25c   : > { %s1258_s15 = smov 128   ;;  %s1259_s8 = smov 8  }
 0x25d   : > { %703 = dma.vmem_to_hbm [thread:$0]  (%p1494_p5), %s1504_s29, %s915_s23, %s1506_s16, %s676_s20, %s1258_s15, %s1258_s15, %s1259_s8  }
 0x25e PF: > { %s712_s11 = sand.u32 1, %s1235_s24   ;;  %p1577_p6 = scmp.ne.s32.totalorder %s1565_s14, 0 }
 0x25f   : > { %p1578_p11 = scmp.ge.s32.totalorder %s1247_s27, 2  ;;  %s713_s19 = scalar_lea.sflag [#allocation4], %s712_s11 }
 0x261   : > { %p979_p9 = pnand %p1578_p11, %p1577_p6 }
 0x263   : > { %p980_p10 = pneg %p979_p9 }
 0x265   : > { %1230 = dma.done.wait (%p980_p10), %s713_s19, 768  }
 0x266   : > { %1232 = vsyncadd (%p980_p10), %s713_s19, 4294966528  ;;  %s1579_s13 = sld [smem:[#allocation15_spill]]  ;;  %p22_p1 = scmp.ge.s32.totalorder %s1325_s30, 4  }
 0x267   : > { %s1580_s24 = smov %s1239_s25  ;;  %s1581_s25 = smov %s1243_s26 }
 0x268   : > { %s1583_s27 = smov %s1325_s30  ;;  %24 = sbr.rel (!%p22_p1) target bundleno = 11 (0xb), region = 105 }
 0x26c   : > { %s1582_s26 = smov %s1579_s13 }
 0x26d   :  { %719 = vsyncpa [#allocation3], 1 }
 0x26e   :  { %721 = vsyncpa [#allocation3 + $0x1], 1 }
 0x26f   :  { %722 = vsyncpa [#allocation6], 1 }
 0x270   :  { %723 = vsyncpa [#allocation9], 1 }
 0x271   :  { %724 = vsyncpa [#allocation4], 1 }
 0x272   :  { %726 = vsyncpa [#allocation4 + $0x1], 1 }

// kernel: tpu_custom_call.1
= control target key start
LH: loop header
LB: loop body
LE: loop exit
PB: predicated region body
PF: predicated region fallthrough
CT: control target
= control target key end

     0   :  { %s1548_s0 = inlined_call_operand.hbm [shape: f32[64,128], index: 0, kind: input, shape index: {}]   ;;  %s1549_s1 = inlined_call_operand.hbm [shape: bf16[128,128], index: 1, kind: input, shape index: {}]   ;;  %s1550_s2 = inlined_call_operand.hbm [shape: bf16[128,128], index: 2, kind: input, shape index: {}]   ;;  %s1551_s3 = inlined_call_operand.hbm [shape: bf16[128,128], index: 3, kind: input, shape index: {}]   ;;  %s1552_s4 = inlined_call_operand.vmem [shape: f32[1,128], index: 4, kind: input, shape index: {}]   ;;  %s1553_s5 = inlined_call_operand.vmem [shape: f32[1,128], index: 5, kind: input, shape index: {}]   ;;  %s1554_s6 = inlined_call_operand.vmem [shape: f32[1,128], index: 6, kind: input, shape index: {}]   ;;  %s1555_s7 = inlined_call_operand.hbm [shape: f32[64,128], index: 7, kind: output, shape index: {}]  }
   0x1   :  { %1558 = sst [smem:[#allocation16_spill]] %s1549_s1 }
   0x2   :  { %1559 = sst [smem:[#allocation17_spill]] %s1550_s2 }
   0x3   :  { %1560 = sst [smem:[#allocation18_spill]] %s1551_s3 }
   0x4   :  { %12 = vsyncpa [#allocation3], 0 }
   0x5   :  { %14 = vsyncpa [#allocation3 + $0x1], 0 }
   0x6   :  { %15 = vsyncpa [#allocation6], 0 }
   0x7   :  { %16 = vsyncpa [#allocation9], 0 }
   0x8   :  { %17 = vsyncpa [#allocation4], 0 }
   0x9   :  { %19 = vsyncpa [#allocation4 + $0x1], 0  ;;  %s1300_s24 = smov 0   ;;  %s1302_s25 = smov 0  }
   0xa   :  { %s1304_s26 = smov 0   ;;  %s1306_s27 = smov 0  }
   0xb LB: > { %s1321_s28 = sadd.s32 4294967295, %s1247_s27   ;;  %s800_s29 = sadd.s32 4294967294, %s1247_s27   ;;  %s1247_s27 = sphi %s1306_s27, %s1583_s27   ;;  %s1243_s26 = sphi %s1304_s26, %s1582_s26   ;;  %s1239_s25 = sphi %s1302_s25, %s1581_s25   ;;  %s1235_s24 = sphi %s1300_s24, %s1580_s24  }
   0xc   : > { %s1325_s30 = sadd.s32 1, %s1247_s27   ;;  %s32_s8 = sadd.s32 1, %s1243_s26 }
   0xd   : > { %s29_s9 = ssub.s32 %s1247_s27, %s1325_s30  ;;  %p39_p0 = scmp.ne.s32.totalorder %s1243_s26, %s1239_s25 }
   0xe   : > { %p30_p1 = scmp.eq.s32.totalorder %s29_s9, 0  ;;  %p40_p2 = scmp.eq.s32.totalorder %s1247_s27, 0 }
   0xf   : > { %p45_p3 = scmp.ne.s32.totalorder %s1239_s25, %s1235_s24  ;;  %p1557_p4 = scmp.eq.s32.totalorder %s1321_s28, 0 }
  0x10   : > { %s1337_s10 = scalar_select %p30_p1, %s1243_s26, %s32_s8  }
  0x11   : > { %p1339_p5 = por %p40_p2, %p39_p0  ;;  %p1345_p6 = por %p1557_p4, %p45_p3 }
  0x12   : > { %1561 = sst [smem:[#allocation15_spill]] %s1337_s10  ;;  %p195_p7 = scmp.eq.s32.totalorder %s1321_s28, 1 }
  0x13   : > { %p201_p8 = scmp.eq.s32.totalorder %s800_s29, 1  ;;  %p801_p9 = scmp.ge.s32.totalorder %s1247_s27, 1 }
  0x14   : > { %p208_p10 = scmp.lt.s32.totalorder %s1247_s27, 3  ;;  %p1352_p11 = por %p195_p7, %p39_p0 }
  0x15   : > { %p1356_p12 = por %p201_p8, %p45_p3  ;;  %s1567_s1 = sld [smem:[#allocation16_spill]] }
  0x16   : > { %p1360_p13 = pnand %p801_p9, %p208_p10  ;;  %s1249_s19 = smov [#allocation5]  }
  0x17   : > { %s1565_s14 = scalar_select %p1356_p12, 1, 0 }
  0x18   : > { %p968_p1 = pneg %p1360_p13  ;;  %s221_s20 = sshll.u32 %s1249_s19, 4  ;;  %s222_s20 = int_to_ptr.vmem [resolvable:$true] %s221_s20 }
  0x19   : > { %s1569_s2 = sld [smem:[#allocation17_spill]]  ;;  %s1250_s8 = smov 64  }
  0x1a   : > { %p1371_p0 = pnand %p968_p1, %p1557_p4  ;;  %s1251_s9 = smov 4  }
  0x1b   : > { %s219_s18 = sshll.u32 %s1567_s1, 4  ;;  %s1570_s3 = sld [smem:[#allocation18_spill]]  ;;  %s220_s18 = int_to_ptr.hbm [resolvable:$true] %s219_s18 }
  0x1c   : > { %971 = dma.hbm_to_vmem [thread:$0]  (!%p1371_p0), %s220_s18, 1024, %s222_s20, [#allocation6], %s1250_s8, %s1250_s8, %s1251_s9  }
  0x1d   : > { %s1252_s1 = smov [#allocation7]   ;;  %s1253_s22 = smov [#allocation8]  }
  0x1e   : > { %s235_s10 = sshll.u32 %s1252_s1, 4  ;;  %s249_s23 = sshll.u32 %s1253_s22, 4  ;;  %s236_s10 = int_to_ptr.vmem [resolvable:$true] %s235_s10  ;;  %s250_s23 = int_to_ptr.vmem [resolvable:$true] %s249_s23 }
  0x1f   : > { %s233_s29 = sshll.u32 %s1569_s2, 4  ;;  %p1556_p2 = scmp.ge.s32.totalorder %s1247_s27, 2  ;;  %s234_s29 = int_to_ptr.hbm [resolvable:$true] %s233_s29 }
  0x20   : > { %974 = dma.hbm_to_vmem [thread:$0]  (!%p1371_p0), %s234_s29, 1024, %s236_s10, [#allocation6], %s1250_s8, %s1250_s8, %s1251_s9  }
  0x21   : > { %s247_s19 = sshll.u32 %s1570_s3, 4  ;;  %268 = sbr.rel (%p1556_p2) target bundleno = 76 (0x4c), region = 40  ;;  %s248_s19 = int_to_ptr.hbm [resolvable:$true] %s247_s19 }
  0x22   : > { %977 = dma.hbm_to_vmem [thread:$0]  (!%p1371_p0), %s248_s19, 1024, %s250_s23, [#allocation9], %s1250_s8, %s1250_s8, %s1251_s9  }
  0x26   : > { %271 = sbr.rel (!%p1339_p5) target bundleno = 76 (0x4c), region = 44  ;;  %s272_s1 = sand.u32 (%p1339_p5), 1, %s1243_s26  }
  0x27   : > { %s277_s18 = smul.u32 (%p1339_p5), 6, %s1247_s27  ;;  %s1397_s8 = scalar_lea.sflag (%p1339_p5), [#allocation3], %s272_s1 }
  0x28   : > { %s952_s20 = smul.u32 (%p1339_p5), 48, %s272_s1 }
  0x29   : > { %s278_s16 = ssub.s32 (%p1339_p5), 8, %s277_s18 }
  0x2a   : > { %p279_p3 = scmp.lt.s32.totalorder (%p1339_p5), %s278_s16, 6  ;;  %s276_s9 = scalar_lea.vmem (%p1339_p5), [#allocation2], %s952_s20 }
  0x2c   : > { %s1585_s16 = smov (!%p279_p3, %s278_s16), 6 }
  0x2d   : > { %s806_s10 = sshll.u32 %s1585_s16, 3 }
  0x2e   : > { %s282_s21 = ssub.s32 48, %s806_s10 }
  0x2f   : > { %s283_s29 = sshll.u32 %s282_s21, 4 }
  0x30   : > { %284 = vsyncadd %s1397_s8, %s283_s29  ;;  %p1400_p5 = scmp.ne.s32.totalorder %s806_s10, 0  ;;  %s918_s17 = smul.u32 48, %s1247_s27 }
  0x31   : > { %s1405_s19 = sshll.u32 %s276_s9, 4  ;;  %s810_s22 = sshll.u32 %s1585_s16, 7  ;;  %s292_s19 = int_to_ptr.vmem [resolvable:$true] %s1405_s19 }
  0x32   : > { %s287_s1 = scalar_lea.hbm %s1548_s0, %s918_s17  ;;  %s1125_s10 = sshrl.u32 %s810_s22, 4 }
  0x33   : > { %s289_s20 = sshll.u32 %s287_s1, 4  ;;  %s1134_s3 = scalar_lea.hbm %s1548_s0, 64  ;;  %s1412_s20 = int_to_ptr.hbm [resolvable:$true] %s289_s20 }
  0x34   : > { %s1123_s21 = sshra.s32 %s1412_s20, 4  ;;  %s1124_s21 = int_to_ptr.hbm [resolvable:$true] %s1123_s21 }
  0x35   : > { %s1130_s29 = scalar_lea.hbm %s1124_s21, %s1125_s10  ;;  %p1135_p10 = scmp.lt.s32.totalorder %s1124_s21, %s1548_s0 }
  0x36   : > { %p1131_p7 = scmp.ne.s32.totalorder %s1124_s21, %s1130_s29  ;;  %p1136_p1 = scmp.lt.s32.totalorder %s1134_s3, %s1130_s29 }
  0x38   : > { %p1132_p8 = pnand %p1131_p7, %p1400_p5  ;;  %p1137_p0 = por %p1136_p1, %p1135_p10 }
  0x3a   : > { %p1133_p9 = pneg %p1132_p8 }
  0x3c   : > { %p1138_p3 = pnand %p1137_p0, %p1133_p9 }
  0x3e   : > { %1141 = shalt.err (!%p1138_p3)
}
  0x3f   : > { %s1142_s18 = sshra.s32 %s292_s19, 4  ;;  %s1254_s2 = smov [#allocation2]   ;;  %s1143_s18 = int_to_ptr.vmem [resolvable:$true] %s1142_s18 }
  0x40   : > { %s1149_s1 = scalar_lea.vmem %s1143_s18, %s1125_s10  ;;  %s1153_s9 = scalar_lea.vmem %s1254_s2, 96 }
  0x41   : > { %p1150_p7 = scmp.ne.s32.totalorder %s1143_s18, %s1149_s1  ;;  %p1155_p4 = scmp.lt.s32.totalorder %s1153_s9, %s1149_s1 }
  0x43   : > { %p1151_p8 = pnand %p1150_p7, %p1400_p5 }
  0x45   : > { %p1152_p2 = pneg %p1151_p8 }
  0x47   : > { %p1157_p12 = pnand %p1155_p4, %p1152_p2 }
  0x49   : > { %1160 = shalt.err (!%p1157_p12)
}
  0x4a   : > { %s1255_s21 = smov 128   ;;  %s1256_s3 = smov 8  }
  0x4b   : > { %297 = dma.hbm_to_vmem [thread:$0]  (%p1400_p5), %s1412_s20, %s810_s22, %s292_s19, %s1397_s8, %s1255_s21, %s1255_s21, %s1256_s3  }
  0x4c PF: > { %303 = sbr.rel (%p1360_p13) target bundleno = 606 (0x25e), region = 48  ;;  %s1440_s10 = sand.u32 (!%p1360_p13), 1, %s1239_s25  }
  0x4d   : > { %s953_s29 = smul.u32 (!%p1360_p13), 48, %s1440_s10  ;;  %s306_s23 = scalar_lea.sflag (!%p1360_p13), [#allocation3], %s1440_s10 }
  0x4f   : > { %s1446_s17 = scalar_lea.vmem (!%p1360_p13), [#allocation2], %s953_s29 }
  0x51   : > { %1218 = dma.done.wait (%p1345_p6), %s306_s23, 768  }
  0x52   : > { %1220 = vsyncadd (%p1345_p6), %s306_s23, 4294966528  ;;  %p1572_p4 = scmp.eq.s32.totalorder %s1321_s28, 0 }
  0x54   : > { %1222 = dma.done.wait (%p1572_p4), [#allocation6], 2048   ;;  %p1573_p12 = pmov %p1572_p4 }
  0x55   : > { %p1574_p13 = pmov %p1572_p4 }
  0x56   : > { %1224 = vsyncadd (%p1573_p12), [#allocation6], 4294965248 }
  0x57   : > { %1226 = dma.done.wait (%p1574_p13), [#allocation9], 1024   ;;  %p1575_p2 = pmov %p1572_p4 }
  0x58   : > { %v926_v0 = vld [vmem:[#allocation5 + $0x38] sm:$0xff]  ;;  %v925_v1 = vld [vmem:[#allocation5 + $0x30] sm:$0xff]  ;;  %v924_v2 = vld [vmem:[#allocation5 + $0x28] sm:$0xff]  ;;  %s1477_s22 = scalar_lea.vmem [#allocation10], %s953_s29  ;;  %s676_s20 = scalar_lea.sflag [#allocation4], %s1440_s10 }
  0x59   : > { %1228 = vsyncadd (%p1575_p2), [#allocation9], 4294966272  ;;  %443 = vmatpush.bf16.msra.mxu0 %v926_v0  ;;  %944 = vmatpush.bf16.msra.mxu3 %v926_v0  ;;  %v923_v3 = vld [vmem:[#allocation5 + $0x20] sm:$0xff]  ;;  %v922_v4 = vld [vmem:[#allocation5 + $0x18] sm:$0xff]  ;;  %s683_s18 = smul.u32 (%p1352_p11), 6, %s1321_s28 }
  0x5a   : > { %v934_v5 = vld [vmem:[#allocation7 + $0x38] sm:$0xff]  ;;  %v921_v6 = vld [vmem:[#allocation5 + $0x10] sm:$0xff]  ;;  %v920_v8 = vld [vmem:[#allocation5 + $0x8] sm:$0xff] }
  0x5b   : > { %544 = vmatpush.bf16.msra.mxu1 %v934_v5  ;;  %v933_v7 = vld [vmem:[#allocation7 + $0x30] sm:$0xff]  ;;  %v932_v9 = vld [vmem:[#allocation7 + $0x28] sm:$0xff]  ;;  %v919_v10 = vld [vmem:[#allocation5] sm:$0xff]  ;;  %s684_s1 = ssub.s32 (%p1352_p11), 8, %s683_s18 }
  0x5c   : > { %v366_v11 = vld [vmem:[%s1446_s17] sm:$0xff]  ;;  %v367_v12 = vld [vmem:[%s1446_s17 + $0x8] sm:$0xff]  ;;  %v368_v13 = vld [vmem:[%s1446_s17 + $0x10] sm:$0xff]  ;;  %p685_p6 = scmp.lt.s32.totalorder (%p1352_p11), %s684_s1, 6 }
  0x5d   : > { %444 = vmatpush.bf16.msra.mxu0 %v925_v1  ;;  %945 = vmatpush.bf16.msra.mxu3 %v925_v1  ;;  %v369_v14 = vld [vmem:[%s1446_s17 + $0x18] sm:$0xff]  ;;  %v931_v15 = vld [vmem:[#allocation7 + $0x20] sm:$0xff]  ;;  %v372_v16 = vpack.c.bf16 %v367_v12, %v366_v11  ;;  %v371_v19 = vld [vmem:[%s1446_s17 + $0x28] sm:$0xff] }
  0x5e   : > { %v373_v17 = vpack.c.bf16 %v369_v14, %v368_v13  ;;  %v370_v18 = vld [vmem:[%s1446_s17 + $0x20] sm:$0xff]  ;;  %v930_v21 = vld [vmem:[#allocation7 + $0x18] sm:$0xff]  ;;  %v928_v23 = vld [vmem:[#allocation7 + $0x8] sm:$0xff] }
  0x5f   : > { %545 = vmatpush.bf16.msra.mxu1 %v933_v7  ;;  %v374_v20 = vpack.c.bf16 %v371_v19, %v370_v18  ;;  %v929_v22 = vld [vmem:[#allocation7 + $0x10] sm:$0xff]  ;;  %v927_v24 = vld [vmem:[#allocation7] sm:$0xff]  ;;  %v942_v35 = vld [vmem:[#allocation8 + $0x38] sm:$0xff] }
  0x60   : > { %v1030_v26 = vld [vmem:[%s1552_s4] ss:$0 sm:$0xff]  ;;  %645 = vmatpush.bf16.msra.mxu2 %v942_v35  ;;  %v941_v36 = vld [vmem:[#allocation8 + $0x30] sm:$0xff]  ;;  %v940_v39 = vld [vmem:[#allocation8 + $0x28] sm:$0xff] }
  0x61   : > { %445 = vmatpush.bf16.msra.mxu0 %v924_v2  ;;  %946 = vmatpush.bf16.msra.mxu3 %v924_v2  ;;  %v939_v43 = vld [vmem:[#allocation8 + $0x20] sm:$0xff]  ;;  %v938_v51 = vld [vmem:[#allocation8 + $0x18] sm:$0xff]  ;;  %v937_v52 = vld [vmem:[#allocation8 + $0x10] sm:$0xff] }
  0x62   : > { %v936_v53 = vld [vmem:[#allocation8 + $0x8] sm:$0xff]  ;;  %v935_v54 = vld [vmem:[#allocation8] sm:$0xff] }
  0x63   : > { %546 = vmatpush.bf16.msra.mxu1 %v932_v9  ;;  %v1031_v56 = vld [vmem:[%s1553_s5] ss:$0 sm:$0xff] }
  0x64   : > { %646 = vmatpush.bf16.msra.mxu2 %v941_v36  ;;  %v1032_v13 = vld [vmem:[%s1554_s6] ss:$0 sm:$0xff] }
  0x65   : > { %446 = vmatpush.bf16.msra.mxu0 %v923_v3  ;;  %947 = vmatpush.bf16.msra.mxu3 %v923_v3 }
  0x67   : > { %547 = vmatpush.bf16.msra.mxu1 %v931_v15 }
  0x68   : > { %647 = vmatpush.bf16.msra.mxu2 %v940_v39 }
  0x69   : > { %447 = vmatpush.bf16.msra.mxu0 %v922_v4  ;;  %948 = vmatpush.bf16.msra.mxu3 %v922_v4 }
  0x6b   : > { %548 = vmatpush.bf16.msra.mxu1 %v930_v21 }
  0x6c   : > { %648 = vmatpush.bf16.msra.mxu2 %v939_v43 }
  0x6d   : > { %448 = vmatpush.bf16.msra.mxu0 %v921_v6  ;;  %949 = vmatpush.bf16.msra.mxu3 %v921_v6 }
  0x6f   : > { %549 = vmatpush.bf16.msra.mxu1 %v929_v22 }
  0x70   : > { %649 = vmatpush.bf16.msra.mxu2 %v938_v51 }
  0x71   : > { %449 = vmatpush.bf16.msra.mxu0 %v920_v8  ;;  %950 = vmatpush.bf16.msra.mxu3 %v920_v8 }
  0x73   : > { %550 = vmatpush.bf16.msra.mxu1 %v928_v23 }
  0x74   : > { %650 = vmatpush.bf16.msra.mxu2 %v937_v52 }
  0x75   : > { %450 = vmatpush.bf16.msra.mxu0 %v919_v10  ;;  %951 = vmatpush.bf16.msra.mxu3 %v919_v10 }
  0x77   : > { %551 = vmatpush.bf16.msra.mxu1 %v927_v24 }
  0x78   : > { %451 = vmatmul.bf16.vlgmr.msra.gmra.mxu0 %v372_v16  ;;  %456 = vmatmul.bf16.vlgmr.msra.gmra.mxu3 %v373_v17 }
  0x79   : > { %651 = vmatpush.bf16.msra.mxu2 %v936_v53 }
  0x7d   : > { %652 = vmatpush.bf16.msra.mxu2 %v935_v54 }
  0x88   : > { %461 = vmatmul.bf16.gmra.mxu3 %v374_v20 }
  0xf5   : > { %v452_v25 = vpop.f32.mrf.mxu0 }
  0xf6   : > { %v453_v28 = vadd.f32 %v1030_v26, %v452_v25 }
  0xf8   : > { %v467_v31 = vmax.f32 %v453_v28, 0.0 }
  0xfb   : > { %v457_v27 = vpop.f32.mrf.mxu3 }
  0xfc   : > { %v458_v37 = vadd.f32 %v1030_v26, %v457_v27 }
  0xfd   : > { %v454_v29 = vpop.f32.mrf.mxu0 }
  0xfe   : > { %v455_v30 = vadd.f32 %v1030_v26, %v454_v29  ;;  %v469_v41 = vmax.f32 %v458_v37, 0.0 }
 0x100   : > { %v468_v32 = vmax.f32 %v455_v30, 0.0 }
 0x102   : > { %v473_v33 = vpack.c.bf16 %v468_v32, %v467_v31 }
 0x103   : > { %v459_v34 = vpop.f32.mrf.mxu3 }
 0x104   : > { %552 = vmatmul.bf16.vlgmr.msra.gmra.mxu1 %v473_v33  ;;  %v460_v38 = vadd.f32 %v1030_v26, %v459_v34 }
 0x106   : > { %v470_v42 = vmax.f32 %v460_v38, 0.0 }
 0x108   : > { %v474_v44 = vpack.c.bf16 %v470_v42, %v469_v41 }
 0x10b   : > { %v462_v40 = vpop.f32.mrf.mxu3 }
 0x10c   : > { %v463_v46 = vadd.f32 %v1030_v26, %v462_v40 }
 0x10e   : > { %v471_v48 = vmax.f32 %v463_v46, 0.0 }
 0x113   : > { %v464_v45 = vpop.f32.mrf.mxu3 }
 0x114   : > { %557 = vmatmul.bf16.gmra.mxu1 %v474_v44  ;;  %v465_v47 = vadd.f32 %v1030_v26, %v464_v45 }
 0x116   : > { %v472_v49 = vmax.f32 %v465_v47, 0.0 }
 0x118   : > { %v475_v50 = vpack.c.bf16 %v472_v49, %v471_v48 }
 0x124   : > { %562 = vmatmul.bf16.gmra.mxu1 %v475_v50 }
 0x181   : > { %v553_v55 = vpop.f32.mrf.mxu1 }
 0x182   : > { %v554_v57 = vadd.f32 %v1031_v56, %v553_v55 }
 0x184   : > { %v568_v60 = vmax.f32 %v554_v57, 0.0 }
 0x189   : > { %v555_v58 = vpop.f32.mrf.mxu1 }
 0x18a   : > { %v556_v59 = vadd.f32 %v1031_v56, %v555_v58 }
 0x18c   : > { %v569_v61 = vmax.f32 %v556_v59, 0.0 }
 0x18e   : > { %v574_v62 = vpack.c.bf16 %v569_v61, %v568_v60 }
 0x190   : > { %653 = vmatmul.bf16.vlgmr.msra.gmra.mxu2 %v574_v62 }
 0x191   : > { %v558_v63 = vpop.f32.mrf.mxu1 }
 0x192   : > { %v559_v0 = vadd.f32 %v1031_v56, %v558_v63 }
 0x194   : > { %v570_v3 = vmax.f32 %v559_v0, 0.0 }
 0x199   : > { %v560_v1 = vpop.f32.mrf.mxu1 }
 0x19a   : > { %v561_v2 = vadd.f32 %v1031_v56, %v560_v1 }
 0x19c   : > { %v571_v4 = vmax.f32 %v561_v2, 0.0 }
 0x19e   : > { %v575_v5 = vpack.c.bf16 %v571_v4, %v570_v3 }
 0x1a0   : > { %658 = vmatmul.bf16.gmra.mxu2 %v575_v5 }
 0x1a1   : > { %v563_v6 = vpop.f32.mrf.mxu1 }
 0x1a2   : > { %v564_v7 = vadd.f32 %v1031_v56, %v563_v6 }
 0x1a4   : > { %v572_v10 = vmax.f32 %v564_v7, 0.0 }
 0x1a9   : > { %v565_v8 = vpop.f32.mrf.mxu1 }
 0x1aa   : > { %v566_v9 = vadd.f32 %v1031_v56, %v565_v8 }
 0x1ac   : > { %v573_v11 = vmax.f32 %v566_v9, 0.0 }
 0x1ae   : > { %v576_v12 = vpack.c.bf16 %v573_v11, %v572_v10 }
 0x1b0   : > { %663 = vmatmul.bf16.gmra.mxu2 %v576_v12 }
 0x213   : > { %v654_v14 = vpop.f32.mrf.mxu2 }
 0x214   : > { %v655_v15 = vadd.f32 %v1032_v13, %v654_v14 }
 0x216   : > { %669 = vst [vmem:[%s1477_s22] sm:$0xff] %v655_v15 }
 0x21b   : > { %v656_v16 = vpop.f32.mrf.mxu2 }
 0x21c   : > { %v657_v17 = vadd.f32 %v1032_v13, %v656_v16 }
 0x21e   : > { %670 = vst [vmem:[%s1477_s22 + $0x8] sm:$0xff] %v657_v17 }
 0x223   : > { %v659_v18 = vpop.f32.mrf.mxu2 }
 0x224   : > { %v660_v19 = vadd.f32 %v1032_v13, %v659_v18 }
 0x226   : > { %671 = vst [vmem:[%s1477_s22 + $0x10] sm:$0xff] %v660_v19 }
 0x22b   : > { %v661_v20 = vpop.f32.mrf.mxu2 }
 0x22c   : > { %v662_v21 = vadd.f32 %v1032_v13, %v661_v20 }
 0x22e   : > { %672 = vst [vmem:[%s1477_s22 + $0x18] sm:$0xff] %v662_v21 }
 0x233   : > { %v664_v22 = vpop.f32.mrf.mxu2 }
 0x234   : > { %v665_v23 = vadd.f32 %v1032_v13, %v664_v22 }
 0x236   : > { %673 = vst [vmem:[%s1477_s22 + $0x20] sm:$0xff] %v665_v23 }
 0x23a   : > { %682 = sbr.rel (!%p1352_p11) target bundleno = 606 (0x25e), region = 68 }
 0x23b   : > { %v666_v24 = vpop.f32.mrf.mxu2 }
 0x23c   : > { %v667_v25 = vadd.f32 %v1032_v13, %v666_v24 }
 0x23e   : > { %674 = vst [vmem:[%s1477_s22 + $0x28] sm:$0xff] %v667_v25 }
 0x23f   : > { %s1587_s1 = smov (!%p685_p6, %s684_s1), 6 }
 0x240   : > { %s911_s2 = sshll.u32 %s1587_s1, 3 }
 0x241   : > { %s688_s9 = ssub.s32 48, %s911_s2 }
 0x242   : > { %s689_s21 = sshll.u32 %s688_s9, 4 }
 0x243   : > { %690 = vsyncadd %s676_s20, %s689_s21  ;;  %p1494_p5 = scmp.ne.s32.totalorder %s911_s2, 0  ;;  %s943_s3 = smul.u32 48, %s1321_s28 }
 0x244   : > { %s695_s29 = sshll.u32 %s1477_s22, 4  ;;  %s915_s23 = sshll.u32 %s1587_s1, 7  ;;  %s1504_s29 = int_to_ptr.vmem [resolvable:$true] %s695_s29 }
 0x245   : > { %s693_s15 = scalar_lea.hbm %s1555_s7, %s943_s3  ;;  %s1162_s8 = sshra.s32 %s1504_s29, 4  ;;  %s1163_s8 = int_to_ptr.vmem [resolvable:$true] %s1162_s8 }
 0x246   : > { %s697_s16 = sshll.u32 %s693_s15, 4  ;;  %s1164_s11 = sshrl.u32 %s915_s23, 4  ;;  %s1506_s16 = int_to_ptr.hbm [resolvable:$true] %s697_s16 }
 0x247   : > { %s1169_s19 = scalar_lea.vmem %s1163_s8, %s1164_s11  ;;  %s1257_s28 = smov [#allocation10]  }
 0x248   : > { %p1170_p11 = scmp.ne.s32.totalorder %s1163_s8, %s1169_s19  ;;  %s1173_s22 = scalar_lea.vmem %s1257_s28, 96 }
 0x249   : > { %p1175_p1 = scmp.lt.s32.totalorder %s1173_s22, %s1169_s19 }
 0x24a   : > { %p1171_p9 = pnand %p1170_p11, %p1494_p5 }
 0x24c   : > { %p1172_p10 = pneg %p1171_p9 }
 0x24e   : > { %p1177_p0 = pnand %p1175_p1, %p1172_p10 }
 0x250   : > { %1180 = shalt.err (!%p1177_p0)
}
 0x251   : > { %s1181_s18 = sshra.s32 %s1506_s16, 4  ;;  %s1192_s3 = scalar_lea.hbm %s1555_s7, 64  ;;  %s1182_s18 = int_to_ptr.hbm [resolvable:$true] %s1181_s18 }
 0x252   : > { %s1188_s2 = scalar_lea.hbm %s1182_s18, %s1164_s11  ;;  %p1193_p4 = scmp.lt.s32.totalorder %s1182_s18, %s1555_s7 }
 0x253   : > { %p1189_p3 = scmp.ne.s32.totalorder %s1182_s18, %s1188_s2  ;;  %p1194_p12 = scmp.lt.s32.totalorder %s1192_s3, %s1188_s2 }
 0x255   : > { %p1190_p7 = pnand %p1189_p3, %p1494_p5  ;;  %p1195_p13 = por %p1194_p12, %p1193_p4 }
 0x257   : > { %p1191_p8 = pneg %p1190_p7 }
 0x259   : > { %p1196_p2 = pnand %p1195_p13, %p1191_p8 }
 0x25b   : > { %1199 = shalt.err (!%p1196_p2)
}
 0x25c   : > { %s1258_s15 = smov 128   ;;  %s1259_s8 = smov 8  }
 0x25d   : > { %703 = dma.vmem_to_hbm [thread:$0]  (%p1494_p5), %s1504_s29, %s915_s23, %s1506_s16, %s676_s20, %s1258_s15, %s1258_s15, %s1259_s8  }
 0x25e PF: > { %s712_s11 = sand.u32 1, %s1235_s24   ;;  %p1577_p6 = scmp.ne.s32.totalorder %s1565_s14, 0 }
 0x25f   : > { %p1578_p11 = scmp.ge.s32.totalorder %s1247_s27, 2  ;;  %s713_s19 = scalar_lea.sflag [#allocation4], %s712_s11 }
 0x261   : > { %p979_p9 = pnand %p1578_p11, %p1577_p6 }
 0x263   : > { %p980_p10 = pneg %p979_p9 }
 0x265   : > { %1230 = dma.done.wait (%p980_p10), %s713_s19, 768  }
 0x266   : > { %1232 = vsyncadd (%p980_p10), %s713_s19, 4294966528  ;;  %s1579_s13 = sld [smem:[#allocation15_spill]]  ;;  %p22_p1 = scmp.ge.s32.totalorder %s1325_s30, 4  }
 0x267   : > { %s1580_s24 = smov %s1239_s25  ;;  %s1581_s25 = smov %s1243_s26 }
 0x268   : > { %s1583_s27 = smov %s1325_s30  ;;  %24 = sbr.rel (!%p22_p1) target bundleno = 11 (0xb), region = 105 }
 0x26c   : > { %s1582_s26 = smov %s1579_s13 }
 0x26d   :  { %719 = vsyncpa [#allocation3], 1 }
 0x26e   :  { %721 = vsyncpa [#allocation3 + $0x1], 1 }
 0x26f   :  { %722 = vsyncpa [#allocation6], 1 }
 0x270   :  { %723 = vsyncpa [#allocation9], 1 }
 0x271   :  { %724 = vsyncpa [#allocation4], 1 }
 0x272   :  { %726 = vsyncpa [#allocation4 + $0x1], 1 }

</bundles_post_ra>
